<compile_context>
chip_gen: v5e
topology: v5e:2x2
jax: 0.10.0
libtpu: 0.0.40
codegen_flags: <defaults>
</compile_context>

<pallas_src>
import jax
import jax.numpy as jnp
from jax.experimental import pallas as pl
from jax.experimental.pallas import tpu as pltpu


def _round_up(x, m):
    return ((x + m - 1) // m) * m


def _sum_softmax_kernel(x_ref, o_ref):
    # x_ref: (tn, C, HW) block in VMEM; o_ref: (tn, C)
    # Spatial reduction in f32 without materializing a full f32 copy of the block.
    v1 = jnp.sum(x_ref[...], axis=-1, dtype=jnp.float32)        # (tn, C)
    # Numerically stable softmax over the channel axis (exact divide: the
    # denom is only (tn, 1), so this is free next to the HBM stream).
    m = jnp.max(v1, axis=-1, keepdims=True)
    e = jnp.exp(v1 - m)
    denom = jnp.sum(e, axis=-1, keepdims=True)
    o_ref[...] = (e / denom).astype(o_ref.dtype)


def sum_softmax(x):
    """x: (N, C, H, W) -> softmax(sum(x, [2,3]), axis=1) with shape (N, C)."""
    n, c, h, w = x.shape
    hw = h * w
    # Lane-dense layout: contiguous NCHW reshape is layout-only in XLA.
    x2 = x.reshape(n, c, hw)

    itemsize = jnp.dtype(x.dtype).itemsize
    # Padded VMEM footprint of one (C, HW) plane: C pads to the sublane
    # multiple for this dtype, HW pads to a lane multiple of 128.
    sublane = max(8, 32 // itemsize)              # 8 f32, 16 bf16, 32 int8
    padded_plane = _round_up(c, sublane) * _round_up(hw, 128) * itemsize

    # Generation-aware budgeting: v7x has 64 MiB physical VMEM per TC,
    # v5e/v6e have 128 MiB.
    try:
        vmem_cap = int(pltpu.get_tpu_info().vmem_capacity_bytes)
    except Exception:
        vmem_cap = 64 * 1024 * 1024
    if vmem_cap >= 100 * 1024 * 1024:             # v5e / v6e class (128 MiB)
        max_block_bytes = 24 * 1024 * 1024
        vmem_limit = 64 * 1024 * 1024
    else:                                         # v7x class (64 MiB)
        max_block_bytes = 14 * 1024 * 1024
        vmem_limit = 44 * 1024 * 1024

    # Batch tile chosen from the padded, double-buffered footprint.
    tn = max(1, min(n, max_block_bytes // max(1, padded_plane)))
    # Keep at least 2 grid steps when the batch is big enough so that
    # dimension_semantics=("parallel",) can shard across v7x's two TCs.
    if n >= 16:
        tn = min(tn, pl.cdiv(n, 2))
    if tn < n:
        tn = max(8, (tn // 8) * 8)                # sublane-aligned output block
        tn = min(tn, n)
    grid = (pl.cdiv(n, tn),)

    # Declared limit covers 2x (double-buffered) input block + small outputs,
    # including the max(8, ...) bump above.
    block_bytes = tn * padded_plane
    vmem_limit = max(vmem_limit, 2 * block_bytes + 4 * 1024 * 1024)

    cost = pl.CostEstimate(
        flops=n * c * hw + 4 * n * c,             # reduction + softmax arithmetic
        transcendentals=n * c,                    # exp per (n, c) entry
        bytes_accessed=(n * c * hw + n * c) * itemsize,
    )

    return pl.pallas_call(
        _sum_softmax_kernel,
        out_shape=jax.ShapeDtypeStruct((n, c), x.dtype),
        grid=grid,
        in_specs=[pl.BlockSpec((tn, c, hw), lambda i: (i, 0, 0))],
        out_specs=pl.BlockSpec((tn, c), lambda i: (i, 0)),
        compiler_params=pltpu.CompilerParams(
            dimension_semantics=("parallel",),
            vmem_limit_bytes=vmem_limit,
        ),
        cost_estimate=cost,
    )(x2)


def _ref(x):
    v1 = jnp.sum(x, axis=(2, 3))
    return jax.nn.softmax(v1, axis=1)


if __name__ == "__main__":
    key = jax.random.PRNGKey(0)
    # Small NCHW shape consistent with the module's 4-D input.
    x = jax.random.normal(key, (2, 4, 16, 16), dtype=jnp.float32)

    out = sum_softmax(x)
    out = jax.block_until_ready(out)

    ref = _ref(x)
    assert out.shape == (2, 4)
    assert jnp.allclose(out, ref, atol=1e-5, rtol=1e-5), "mismatch vs reference"

    print("KERNEL_OK")
</pallas_src>

<mosaic_0001>
module attributes {stable_mosaic.version = 11 : i64} {
  func.func @_sum_softmax_kernel(%arg0: i32, %arg1: memref<2x4x256xf32, #tpu.memory_space<vmem>>, %arg2: memref<2x4xf32, #tpu.memory_space<vmem>>) attributes {dimension_semantics = [#tpu.dimension_semantics<parallel>], iteration_bounds = array<i64: 1>, scalar_prefetch = 0 : i64, scratch_operands = 0 : i64, tpu.core_type = #tpu.core_type<tc>, window_params = [{transform_indices = @transform_0, window_bounds = array<i64: 2, 4, 256>}, {transform_indices = @transform_1, window_bounds = array<i64: 2, 4>}]} {
    %c0 = arith.constant 0 : index
    %c0_0 = arith.constant 0 : index
    %c0_1 = arith.constant 0 : index
    %0 = vector.load %arg1[%c0, %c0_0, %c0_1] : memref<2x4x256xf32, #tpu.memory_space<vmem>>, vector<2x4x256xf32>
    %cst = arith.constant dense<0.000000e+00> : vector<2x4xf32>
    %1 = vector.multi_reduction <add>, %0, %cst [2] : vector<2x4x256xf32> to vector<2x4xf32>
    %cst_2 = arith.constant dense<0xFF800000> : vector<2xf32>
    %2 = vector.multi_reduction <maximumf>, %1, %cst_2 [1] : vector<2x4xf32> to vector<2xf32>
    %3 = vector.shape_cast %2 : vector<2xf32> to vector<2x1xf32>
    %4 = vector.broadcast %3 : vector<2x1xf32> to vector<2x4xf32>
    %5 = arith.subf %1, %4 : vector<2x4xf32>
    %6 = math.exp %5 : vector<2x4xf32>
    %cst_3 = arith.constant dense<0.000000e+00> : vector<2xf32>
    %7 = vector.multi_reduction <add>, %6, %cst_3 [1] : vector<2x4xf32> to vector<2xf32>
    %8 = vector.shape_cast %7 : vector<2xf32> to vector<2x1xf32>
    %9 = vector.broadcast %8 : vector<2x1xf32> to vector<2x4xf32>
    %10 = arith.divf %6, %9 : vector<2x4xf32>
    %c0_4 = arith.constant 0 : index
    %c0_5 = arith.constant 0 : index
    %11 = vector.load %arg2[%c0_4, %c0_5] : memref<2x4xf32, #tpu.memory_space<vmem>>, vector<2x4xf32>
    tpu.vector_store %arg2[%c0_4, %c0_5], %10 {strides = array<i32>} : memref<2x4xf32, #tpu.memory_space<vmem>>, vector<2x4xf32>,
    return
  }
  func.func @transform_0(%arg0: i32) -> (i32, i32, i32) {
    %c0_i32 = arith.constant 0 : i32
    %c0_i32_0 = arith.constant 0 : i32
    %c0_i32_1 = arith.constant 0 : i32
    return %arg0, %c0_i32, %c0_i32_0 : i32, i32, i32
  }
  func.func @transform_1(%arg0: i32) -> (i32, i32) {
    %c0_i32 = arith.constant 0 : i32
    %c0_i32_0 = arith.constant 0 : i32
    return %arg0, %c0_i32 : i32, i32
  }
}

</mosaic_0001>

<bundles_post_ra>
// kernel: tpu_custom_call.1
= control target key start
LH: loop header
LB: loop body
LE: loop exit
PB: predicated region body
PF: predicated region fallthrough
CT: control target
= control target key end

     0   :  { %6 = vsyncpa [#allocation3], 0  ;;  %s258_s0 = inlined_call_operand.hbm [shape: f32[2,4,256], index: 0, kind: input, shape index: {}]   ;;  %s259_s1 = inlined_call_operand.hbm [shape: f32[2,4], index: 1, kind: output, shape index: {}]  }
   0x1   :  { %7 = vsyncpa [#allocation4], 0  ;;  %s12_s8 = sshll.u32 %s258_s0, 4  ;;  %s223_s9 = smov [#allocation2]   ;;  %s13_s8 = int_to_ptr.hbm [resolvable:$true] %s12_s8 }
   0x2   :  { %s14_s10 = sshll.u32 %s223_s9, 4  ;;  %s224_s11 = smov 128   ;;  %s15_s10 = int_to_ptr.vmem [resolvable:$true] %s14_s10 }
   0x3   :  { %s225_s12 = smov 8  }
   0x4   :  { %20 = dma.hbm_to_vmem [thread:$0]  %s13_s8, 256, %s15_s10, [#allocation3], %s224_s11, %s224_s11, %s225_s12  }
   0x5   :  { %219 = dma.done.wait [#allocation3], 256  }
   0x6   :  { %220 = vsyncadd [#allocation3], 4294967040  ;;  %v25_v0 = vld [vmem:[#allocation2] sm:$0xff]  ;;  %v26_v1 = vld [vmem:[#allocation2 + $0x8] sm:$0xff]  ;;  %vm40_vm0 = vcmask 1043456   ;;  %v53_v13 = vlaneseq  ;;  %vm57_vm1 = vcmask 1041409  }
   0x7   :  { %29 = vst [vmem:[#allocation1] ss:$2 sm:$0xff] %v25_v0  ;;  %vm60_vm2 = vcmask 25600   ;;  %v226_v20 = vmov 0   ;;  %s227_s0 = smov [#allocation5]   ;;  %s145_s16 = sshll.u32 %s259_s1, 4  ;;  %s146_s16 = int_to_ptr.hbm [resolvable:$true] %s145_s16 }
   0x8   :  { %33 = vst [vmem:[#allocation1 + $0x10] ss:$2 sm:$0xff] %v26_v1  ;;  %v241_v14 = vand.u32 127, %v53_v13  ;;  %161 = vset.pattern.permute.xlu2 %v226_v20  ;;  %160 = vset.pattern.permute.xlu1 %v226_v20  ;;  %s143_s13 = sshll.u32 %s227_s0, 4  ;;  %s144_s13 = int_to_ptr.vmem [resolvable:$true] %s143_s13 }
   0x9   :  { %162 = vset.pattern.permute.xlu0 %v226_v20 }
   0xe   :  { %v30_v2 = vld.sshfl [vmem:[#allocation1] sm:$0xff pattern:$0x75316420]  ;;  %v31_v3 = vld.sshfl [vmem:[#allocation1 + $0x8] sm:$0xff pattern:$0x75316420] }
   0xf   :  { %v41_v4 = vsel %vm40_vm0, %v30_v2, 0.0  ;;  %v42_v5 = vsel %vm40_vm0, %v31_v3, 0.0  ;;  %v34_v7 = vld.sshfl [vmem:[#allocation1 + $0x10] sm:$0xff pattern:$0x75316420] }
  0x10   :  { %v43_v6 = vadd.f32 %v42_v5, %v41_v4  ;;  %v35_v8 = vld.sshfl [vmem:[#allocation1 + $0x18] sm:$0xff pattern:$0x75316420]  ;;  %v46_v9 = vsel %vm40_vm0, %v34_v7, 0.0 }
  0x11   :  { %v47_v10 = vsel %vm40_vm0, %v35_v8, 0.0 }
  0x12   :  { %44 = vadd.xlane.f32.xlu0 %v43_v6  ;;  %v48_v11 = vadd.f32 %v47_v10, %v46_v9 }
  0x1a   :  { %49 = vadd.xlane.f32.xlu0 %v48_v11 }
  0x85   :  { %v45_v12 = vpop.xlane.xlu0 %44 }
  0x86   :  { %v55_v16 = vperm.slane %v45_v12, %v241_v14 }
  0x8d   :  { %v50_v15 = vpop.xlane.xlu0 %49 }
  0x8e   :  { %v56_v17 = vperm.slane %v50_v15, %v241_v14 }
  0x90   :  { %v58_v18 = vsel %vm57_vm1, %v56_v17, %v55_v16 }
  0x91   :  { %v61_v19 = vsel %vm60_vm2, %v58_v18, -inf }
  0x92   :  { %62 = vmax.xlane.f32.xlu1 %v61_v19 }
 0x105   :  { %v63_v21 = vpop.xlane.xlu1 %62 }
 0x106   :  { %v65_v22 = vperm.slane %v63_v21, 0  ;;  %v66_v23 = vperm.slane %v63_v21, 1 }
 0x108   :  { %v69_v24 = vsub.f32 %v45_v12, %v65_v22  ;;  %v70_v25 = vsub.f32 %v50_v15, %v66_v23 }
 0x10a   :  { %v71_v26 = vmul.f32 1.442695, %v69_v24  ;;  %v73_v27 = vmul.f32 1.442695, %v70_v25 }
 0x10c   :  { %163 = vpow2.f32 %v71_v26 }
 0x10d   :  { %165 = vpow2.f32 %v73_v27 }
 0x112   :  { %v164_v28 = vpop.eup %163 }
 0x113   :  { %v166_v29 = vpop.eup %165  ;;  %78 = vperm.xlu1 %160, %v164_v28  }
 0x114   :  { %81 = vperm.xlu2 %161, %v166_v29  }
 0x16e   :  { %v82_v30 = vpop.permute.xlu2 %81 }
 0x16f   :  { %v84_v32 = vperm.slane %v82_v30, %v241_v14 }
 0x185   :  { %v79_v31 = vpop.permute.xlu1 %78 }
 0x186   :  { %v83_v33 = vperm.slane %v79_v31, %v241_v14 }
 0x188   :  { %v85_v34 = vsel %vm57_vm1, %v84_v32, %v83_v33 }
 0x189   :  { %v87_v35 = vsel %vm60_vm2, %v85_v34, 0.0 }
 0x18a   :  { %88 = vadd.xlane.f32.xlu2 %v87_v35 }
 0x1fd   :  { %v89_v36 = vpop.xlane.xlu2 %88 }
 0x1fe   :  { %v91_v37 = vperm.slane %v89_v36, 0  ;;  %v92_v38 = vperm.slane %v89_v36, 1 }
 0x200   :  { %167 = vrcp.f32 %v91_v37  ;;  %v106_v45 = vand.u32 2147483648, %v91_v37  ;;  %v121_v46 = vand.u32 2147483648, %v92_v38  ;;  %v104_v48 = vand.u32 2147483647, %v91_v37 }
 0x201   :  { %169 = vrcp.f32 %v92_v38  ;;  %v119_v50 = vand.u32 2147483647, %v92_v38  ;;  %vm100_vm5 = vweird.f32 %v91_v37  ;;  %vm115_vm6 = vweird.f32 %v92_v38 }
 0x202   :  { %v107_v53 = vor.u32 1.1754944e-38, %v106_v45  ;;  %v122_v54 = vor.u32 1.1754944e-38, %v121_v46  ;;  %vm105_vm9 = vcmp.eq.f32.partialorder %v104_v48, 8.507059e+37 }
 0x203   :  { %vm120_vm10 = vcmp.eq.f32.partialorder %v119_v50, 8.507059e+37 }
 0x206   :  { %v168_v39 = vpop.eup %167 }
 0x207   :  { %v170_v40 = vpop.eup %169  ;;  %v96_v41 = vmul.f32 %v168_v39, %v91_v37  ;;  %vm101_vm3 = vweird.f32 %v168_v39 }
 0x208   :  { %v111_v42 = vmul.f32 %v170_v40, %v92_v38  ;;  %vm116_vm4 = vweird.f32 %v170_v40  ;;  %vm102_vm7 = vmor %vm100_vm5, %vm101_vm3 }
 0x209   :  { %v97_v43 = vsub.f32 1.0, %v96_v41  ;;  %vm117_vm8 = vmor %vm115_vm6, %vm116_vm4 }
 0x20a   :  { %v112_v44 = vsub.f32 1.0, %v111_v42 }
 0x20b   :  { %v98_v47 = vmul.f32 %v168_v39, %v97_v43 }
 0x20c   :  { %v113_v49 = vmul.f32 %v170_v40, %v112_v44 }
 0x20d   :  { %v99_v51 = vadd.f32 %v168_v39, %v98_v47 }
 0x20e   :  { %v114_v52 = vadd.f32 %v170_v40, %v113_v49 }
 0x20f   :  { %v103_v55 = vsel %vm102_vm7, %v168_v39, %v99_v51 }
 0x210   :  { %v118_v56 = vsel %vm117_vm8, %v170_v40, %v114_v52  ;;  %v108_v57 = vsel %vm105_vm9, %v107_v53, %v103_v55 }
 0x211   :  { %v123_v58 = vsel %vm120_vm10, %v122_v54, %v118_v56  ;;  %v109_v59 = vmul.f32 %v164_v28, %v108_v57 }
 0x212   :  { %v124_v60 = vmul.f32 %v166_v29, %v123_v58 }
 0x213   :  { %128 = vperm.xlu0 %162, %v109_v59  }
 0x214   :  { %131 = vperm.xlu1 %160, %v124_v60  }
 0x285   :  { %v129_v61 = vpop.permute.xlu0 %128 }
 0x286   :  { %v132_v62 = vpop.permute.xlu1 %131  ;;  %v133_v63 = vperm.slane %v129_v61, %v241_v14 }
 0x287   :  { %v134_v0 = vperm.slane %v132_v62, %v241_v14 }
 0x289   :  { %v135_v1 = vsel %vm57_vm1, %v134_v0, %v133_v63 }
 0x28a   :  { %137 = vst.msk [vmem:[#allocation5] sm:$0x3] %vm60_vm2, %v135_v1 }
 0x28b   :  { %148 = dma.vmem_to_hbm [thread:$0]  %s144_s13, 32, %s146_s16, [#allocation4]  }
 0x28c   :  { %221 = dma.done.wait [#allocation4], 32  }
 0x28d   :  { %222 = vsyncadd [#allocation4], 4294967264 }
 0x28e   :  { %153 = vsyncpa [#allocation3], 1 }
 0x28f   :  { %154 = vsyncpa [#allocation4], 1 }

</bundles_post_ra>
